<compile_context>
chip_gen: v7x
topology: tpu7x:2x2x1
jax: 0.10.0
libtpu: 0.0.40
codegen_flags: <defaults>
</compile_context>

<pallas_src>
import functools

import jax
import jax.numpy as jnp
from jax.experimental import pallas as pl
from jax.experimental.pallas import tpu as pltpu


_LANE = 128
_TARGET_BLOCK_BYTES = 4 * 1024 * 1024   # per-input, per-pipeline-buffer
_MAX_BLOCK_BYTES = 8 * 1024 * 1024      # above this -> XLA fallback (no D-tiling yet)
_MAX_TB = 16384                         # bounds unroll count / output block lanes
_MIN_KERNEL_ELEMS = 32 * 1024           # below this, fused XLA beats a kernel launch
_VMEM_LIMIT_BYTES = 48 * 1024 * 1024    # 2 inputs x 2 buffers x 4 MiB + headroom


def _round_up(x, m):
    return ((x + m - 1) // m) * m


def _mulsum_row_kernel(f_ref, c_ref, o_ref, *, acc_dtype, rc):
    """(tb, D) tiles -> (1, tb) lane-dense row of per-row dot products.

    Processes `rc` rows at a time so temporaries stay ~vreg-resident (no
    spilled full-tile f32 product) and only a small, fully (8,128)-aligned
    (rc, 128) transpose ever hits the XLU.
    """
    tb, D = f_ref.shape
    for r0 in range(0, tb, rc):
        # Fold the feature dim down to a single 128-lane column with plain
        # VPU adds (no cross-lane movement, no materialized (tb, D) product).
        acc = (f_ref[r0:r0 + rc, 0:_LANE].astype(acc_dtype) *
               c_ref[r0:r0 + rc, 0:_LANE].astype(acc_dtype))
        for d0 in range(_LANE, D, _LANE):
            acc = acc + (f_ref[r0:r0 + rc, d0:d0 + _LANE].astype(acc_dtype) *
                         c_ref[r0:r0 + rc, d0:d0 + _LANE].astype(acc_dtype))
        # Tiny aligned (rc, 128) -> (128, rc) transpose (XLU, rc/8 vregs) then
        # a sublane reduction yields a lane-dense (1, rc) slice -> dense vst.
        row = jnp.sum(acc.T, axis=0, keepdims=True)
        o_ref[0:1, r0:r0 + rc] = row.astype(o_ref.dtype)


def _mulsum_col_kernel(f_ref, c_ref, o_ref, *, acc_dtype):
    """(tb, D) tiles -> (tb, 1) column.  Fallback path when D % 128 != 0."""
    prod = f_ref[...].astype(acc_dtype) * c_ref[...].astype(acc_dtype)
    o_ref[...] = jnp.sum(prod, axis=1, keepdims=True).astype(o_ref.dtype)
    # Output here is a tiny fraction of HBM traffic; masked (tb,1) stores are
    # acceptable (perf review: low priority).


def discriminator_forward(features, centers):
    """Pallas-TPU equivalent of `torch.sum(features * centers, dim=1)`."""
    assert features.ndim == 2 and features.shape == centers.shape, (
        features.shape, centers.shape)
    B, D = features.shape
    out_dtype = jnp.result_type(features.dtype, centers.dtype)

    if not jnp.issubdtype(out_dtype, jnp.floating):
        # TODO(synk): PyTorch promotes integer sums to int64; JAX on TPU
        # usually runs with x64 disabled, so accumulate/return int32 here.
        return jnp.sum(features.astype(jnp.int32) * centers.astype(jnp.int32),
                       axis=1)

    acc_dtype = jnp.float32
    itemsize = max(jnp.dtype(features.dtype).itemsize,
                   jnp.dtype(centers.dtype).itemsize)

    def _xla_fallback():
        prod = features.astype(acc_dtype) * centers.astype(acc_dtype)
        return jnp.sum(prod, axis=1).astype(out_dtype)

    # Tiny / skinny problems: a pallas_call launch + one grid step costs more
    # than the whole fused elementwise+reduce in XLA.
    if B * D < _MIN_KERNEL_ELEMS or B < 128:
        return _xla_fallback()

    lane_dense = (D % _LANE == 0)

    # Byte-based batch-tile sizing (same per-step HBM traffic for bf16 & f32).
    row_bytes = D * itemsize
    tb = max(1, _TARGET_BLOCK_BYTES // row_bytes)
    tb = min(tb, _MAX_TB)
    if lane_dense:
        # Cap at ~half the batch (rounded to 128) so the "parallel" grid axis
        # has >= 2 steps and both v7x TensorCores get work.
        tb = min(tb, _round_up(pl.cdiv(B, 2), _LANE))
        tb = max(_LANE, (tb // _LANE) * _LANE)
    else:
        tb = min(tb, _round_up(pl.cdiv(B, 2), 8))
        tb = max(8, (tb // 8) * 8)

    if tb * row_bytes > _MAX_BLOCK_BYTES:
        # TODO(synk): add a D-tiled accumulator path (second "arbitrary" grid
        # axis + pl.when init/finalize) for very large feature dims.
        return _xla_fallback()

    grid = (pl.cdiv(B, tb),)
    in_specs = [
        pl.BlockSpec((tb, D), lambda i: (i, 0)),
        pl.BlockSpec((tb, D), lambda i: (i, 0)),
    ]

    if lane_dense:
        rc = 256 if tb % 256 == 0 else _LANE
        kernel = functools.partial(_mulsum_row_kernel, acc_dtype=acc_dtype, rc=rc)
        out_shape = jax.ShapeDtypeStruct((1, B), out_dtype)
        out_specs = pl.BlockSpec((1, tb), lambda i: (0, i))
    else:
        kernel = functools.partial(_mulsum_col_kernel, acc_dtype=acc_dtype)
        out_shape = jax.ShapeDtypeStruct((B, 1), out_dtype)
        out_specs = pl.BlockSpec((tb, 1), lambda i: (i, 0))

    cost = pl.CostEstimate(
        flops=2 * B * D,
        transcendentals=0,
        bytes_accessed=2 * B * D * itemsize + B * jnp.dtype(out_dtype).itemsize,
    )

    out = pl.pallas_call(
        kernel,
        out_shape=out_shape,
        grid_spec=pltpu.PrefetchScalarGridSpec(
            num_scalar_prefetch=0,
            grid=grid,
            in_specs=in_specs,
            out_specs=out_specs,
        ),
        compiler_params=pltpu.CompilerParams(
            dimension_semantics=("parallel",),
            vmem_limit_bytes=_VMEM_LIMIT_BYTES,
        ),
        cost_estimate=cost,
    )(features, centers)

    return out[0] if lane_dense else out[:, 0]


def _check(B, D, dtype, rtol, atol):
    key = jax.random.PRNGKey(0)
    kf, kc = jax.random.split(key)
    features = jax.random.normal(kf, (B, D), dtype=jnp.float32).astype(dtype)
    centers = jax.random.normal(kc, (B, D), dtype=jnp.float32).astype(dtype)

    out = jax.block_until_ready(discriminator_forward(features, centers))

    ref = jnp.sum(features.astype(jnp.float32) * centers.astype(jnp.float32),
                  axis=1)
    assert out.shape == (B,), (out.shape, B)
    assert jnp.allclose(out.astype(jnp.float32), ref, rtol=rtol, atol=atol), (
        "mismatch", B, D, dtype)


if __name__ == "__main__":
    # Lane-dense path, 2-step grid (megacore-friendly), single row-chunk.
    _check(512, 256, jnp.float32, rtol=1e-5, atol=1e-4)
    # Lane-dense path, multi-chunk kernel body (tb=1024, rc=256).
    _check(2048, 128, jnp.float32, rtol=1e-5, atol=1e-4)
    # Ragged batch + partial final output block on the lane-dense path.
    _check(1000, 384, jnp.float32, rtol=1e-5, atol=1e-4)
    # D not a multiple of 128 -> column-output fallback kernel.
    _check(1024, 96, jnp.float32, rtol=1e-5, atol=1e-4)
    # bf16 inputs: byte-sized tiles, f32 accumulation, bf16 store.
    _check(512, 256, jnp.bfloat16, rtol=2e-2, atol=2e-1)
    # Tiny problem -> fused XLA fallback.
    _check(16, 32, jnp.float32, rtol=1e-5, atol=1e-5)
    # Integer inputs -> XLA fallback with int32 accumulation.
    ki_f, ki_c = jax.random.split(jax.random.PRNGKey(1))
    fi = jax.random.randint(ki_f, (64, 512), -4, 5, dtype=jnp.int32)
    ci = jax.random.randint(ki_c, (64, 512), -4, 5, dtype=jnp.int32)
    oi = jax.block_until_ready(discriminator_forward(fi, ci))
    assert oi.shape == (64,)
    assert jnp.array_equal(oi, jnp.sum(fi * ci, axis=1))

    print("KERNEL_OK")
</pallas_src>

<mosaic_0001>
module attributes {stable_mosaic.version = 11 : i64} {
  func.func @_mulsum_row_kernel(%arg0: i32, %arg1: memref<256x256xf32, #tpu.memory_space<vmem>>, %arg2: memref<256x256xf32, #tpu.memory_space<vmem>>, %arg3: memref<1x256xf32, #tpu.memory_space<vmem>>) attributes {dimension_semantics = [#tpu.dimension_semantics<parallel>], iteration_bounds = array<i64: 2>, scalar_prefetch = 0 : i64, scratch_operands = 0 : i64, tpu.core_type = #tpu.core_type<tc>, window_params = [{transform_indices = @transform_0, window_bounds = array<i64: 256, 256>}, {transform_indices = @transform_1, window_bounds = array<i64: 256, 256>}, {transform_indices = @transform_2, window_bounds = array<i64: 1, 256>}]} {
    %c0 = arith.constant 0 : index
    %c0_0 = arith.constant 0 : index
    %0 = vector.load %arg1[%c0, %c0_0] : memref<256x256xf32, #tpu.memory_space<vmem>>, vector<256x128xf32>
    %c0_1 = arith.constant 0 : index
    %c0_2 = arith.constant 0 : index
    %1 = vector.load %arg2[%c0_1, %c0_2] : memref<256x256xf32, #tpu.memory_space<vmem>>, vector<256x128xf32>
    %2 = arith.mulf %0, %1 : vector<256x128xf32>
    %c0_3 = arith.constant 0 : index
    %c128 = arith.constant 128 : index
    %3 = vector.load %arg1[%c0_3, %c128] : memref<256x256xf32, #tpu.memory_space<vmem>>, vector<256x128xf32>
    %c0_4 = arith.constant 0 : index
    %c128_5 = arith.constant 128 : index
    %4 = vector.load %arg2[%c0_4, %c128_5] : memref<256x256xf32, #tpu.memory_space<vmem>>, vector<256x128xf32>
    %5 = arith.mulf %3, %4 : vector<256x128xf32>
    %6 = arith.addf %2, %5 : vector<256x128xf32>
    %7 = tpu.transpose %6, [1, 0] : vector<256x128xf32> -> vector<128x256xf32>
    %cst = arith.constant dense<0.000000e+00> : vector<256xf32>
    %8 = vector.multi_reduction <add>, %7, %cst [0] : vector<128x256xf32> to vector<256xf32>
    %9 = vector.shape_cast %8 : vector<256xf32> to vector<1x256xf32>
    %c0_6 = arith.constant 0 : index
    %c0_7 = arith.constant 0 : index
    %10 = vector.load %arg3[%c0_6, %c0_7] : memref<1x256xf32, #tpu.memory_space<vmem>>, vector<1x256xf32>
    tpu.vector_store %arg3[%c0_6, %c0_7], %9 {strides = array<i32>} : memref<1x256xf32, #tpu.memory_space<vmem>>, vector<1x256xf32>,
    return
  }
  func.func @transform_0(%arg0: i32) -> (i32, i32) {
    %c0_i32 = arith.constant 0 : i32
    %c0_i32_0 = arith.constant 0 : i32
    return %arg0, %c0_i32 : i32, i32
  }
  func.func @transform_1(%arg0: i32) -> (i32, i32) {
    %c0_i32 = arith.constant 0 : i32
    %c0_i32_0 = arith.constant 0 : i32
    return %arg0, %c0_i32 : i32, i32
  }
  func.func @transform_2(%arg0: i32) -> (i32, i32) {
    %c0_i32 = arith.constant 0 : i32
    %c0_i32_0 = arith.constant 0 : i32
    return %c0_i32, %arg0 : i32, i32
  }
}

</mosaic_0001>

<bundles_post_ra>
// kernel: tpu_custom_call.1
= control target key start
LH: loop header
LB: loop body
LE: loop exit
PB: predicated region body
PF: predicated region fallthrough
CT: control target
= control target key end

     0   :  { %7 = vsyncpa [#allocation3], 0  ;;  %s1254_s0 = inlined_call_operand.hbm [shape: f32[512,256], index: 0, kind: input, shape index: {}]   ;;  %s1255_s1 = inlined_call_operand.hbm [shape: f32[512,256], index: 1, kind: input, shape index: {}]   ;;  %s1256_s2 = inlined_call_operand.hbm [shape: f32[1,512], index: 2, kind: output, shape index: {}]  }
   0x1   :  { %9 = vsyncpa [#allocation3 + $0x1], 0 }
   0x2   :  { %10 = vsyncpa [#allocation6], 0 }
   0x3   :  { %12 = vsyncpa [#allocation6 + $0x1], 0 }
   0x4   :  { %13 = vsyncpa [#allocation4], 0 }
   0x5   :  { %15 = vsyncpa [#allocation4 + $0x1], 0  ;;  %s900_s9 = smov 0   ;;  %s902_s10 = smov 0  }
   0x6   :  { %s904_s11 = smov 0   ;;  %s906_s12 = smov 0  }
   0x7 LB: > { %s921_s13 = sadd.s32 4294967295, %s877_s12   ;;  %s668_s14 = sadd.s32 4294967294, %s877_s12   ;;  %s877_s12 = sphi %s906_s12, %s1272_s12   ;;  %s873_s11 = sphi %s904_s11, %s1271_s11   ;;  %s869_s10 = sphi %s902_s10, %s1270_s10   ;;  %s865_s9 = sphi %s900_s9, %s1269_s9  }
   0x8   : > { %s925_s15 = sadd.s32 1, %s877_s12   ;;  %s28_s16 = sadd.s32 1, %s873_s11 }
   0x9   : > { %s25_s17 = ssub.s32 %s877_s12, %s925_s15  ;;  %p35_p0 = scmp.ne.s32.totalorder %s873_s11, %s869_s10 }
   0xa   : > { %p26_p1 = scmp.eq.s32.totalorder %s25_s17, 0  ;;  %p36_p2 = scmp.eq.s32.totalorder %s877_s12, 0 }
   0xb   : > { %p41_p3 = scmp.ne.s32.totalorder %s869_s10, %s865_s9  ;;  %p42_p4 = scmp.eq.s32.totalorder %s921_s13, 0 }
   0xc   : > { %s937_s18 = scalar_select %p26_p1, %s873_s11, %s28_s16  }
   0xd   : > { %p939_p5 = por %p36_p2, %p35_p0  ;;  %p943_p6 = por %p42_p4, %p41_p3 }
   0xe   : > { %p91_p7 = scmp.eq.s32.totalorder %s921_s13, 1  ;;  %p97_p8 = scmp.eq.s32.totalorder %s668_s14, 1 }
   0xf   : > { %s1260_s20 = scalar_select %p943_p6, 1, 0 }
  0x10   : > { %p710_p10 = scmp.lt.s32.totalorder %s877_s12, 2  ;;  %p950_p11 = por %p91_p7, %p35_p0 }
  0x11   : > { %p954_p12 = por %p97_p8, %p41_p3  ;;  %s959_s23 = sand.u32 1, %s873_s11  }
  0x12   : > { %s1261_s21 = scalar_select %p950_p11, 1, 0 }
  0x13   : > { %s1262_s22 = scalar_select %p954_p12, 1, 0 }
  0x14   : > { %s689_s24 = sshll.u32 %s877_s12, 13  ;;  %s671_s25 = sshll.u32 %s959_s23, 9 }
  0x15   : > { %s968_s28 = scalar_lea.hbm %s1254_s0, %s689_s24  ;;  %s121_s29 = scalar_lea.vmem [#allocation2], %s671_s25 }
  0x16   : > { %s129_s30 = sshll.u32 %s121_s29, 4  ;;  %p974_p13 = pnand %p710_p10, %p939_p5  ;;  %s978_s30 = int_to_ptr.vmem [resolvable:$true] %s129_s30 }
  0x17   : > { %s118_s4 = scalar_lea.sflag [#allocation3], %s959_s23  ;;  %s747_s5 = scalar_lea.hbm %s968_s28, 8192 }
  0x18   : > { %p748_p0 = scmp.ne.s32.totalorder %s968_s28, %s747_s5  ;;  %p749_p1 = pneg %p974_p13 }
  0x19   : > { %s752_s8 = scalar_lea.hbm %s1254_s0, 16384  ;;  %p753_p4 = scmp.lt.u32.totalorder %s968_s28, %s1254_s0 }
  0x1a   : > { %p750_p2 = pnand %p749_p1, %p748_p0  ;;  %p754_p5 = scmp.lt.u32.totalorder %s752_s8, %s747_s5 }
  0x1b   : > { %p756_p8 = scmp.lt.u32.totalorder %s747_s5, %s968_s28 }
  0x1c   : > { %p751_p3 = pneg %p750_p2  ;;  %p755_p7 = por %p754_p5, %p753_p4 }
  0x1e   : > { %p757_p10 = por %p756_p8, %p755_p7 }
  0x20   : > { %p758_p9 = pnand %p757_p10, %p751_p3 }
  0x22   : > { %761 = shalt.err (!%p758_p9)
}
  0x23   : > { %s762_s17 = scalar_lea.vmem %s978_s30, 8192  ;;  %s879_s19 = smov [#allocation2]  }
  0x24   : > { %p763_p0 = scmp.ne.s32.totalorder %s978_s30, %s762_s17  ;;  %s767_s26 = sshll.u32 %s879_s19, 4  ;;  %s768_s26 = int_to_ptr.vmem [resolvable:$false] %s767_s26 }
  0x25   : > { %s769_s27 = scalar_lea.vmem %s768_s26, 16384  ;;  %p770_p11 = scmp.lt.s32.totalorder %s978_s30, %s768_s26 }
  0x26   : > { %p765_p2 = pnand %p763_p0, %p749_p1  ;;  %p771_p4 = scmp.lt.s32.totalorder %s769_s27, %s762_s17 }
  0x28   : > { %p766_p12 = pneg %p765_p2  ;;  %p772_p5 = por %p771_p4, %p770_p11 }
  0x2a   : > { %p773_p7 = pnand %p772_p5, %p766_p12 }
  0x2c   : > { %776 = shalt.err (!%p773_p7)
}
  0x2d   : > { %s880_s29 = smov 256   ;;  %s881_s5 = smov 16  }
  0x2e   : > { %702 = dma.hbm_to_vmem [thread:$0]  (!%p974_p13), %s968_s28, 8192, %s978_s30, %s118_s4, %s880_s29, %s880_s29, %s881_s5  }
  0x2f   : > { %p679_p9 = scmp.ge.s32.totalorder %s877_s12, 1  ;;  %p159_p11 = scmp.lt.s32.totalorder %s877_s12, 3 }
  0x30   : > { %s1022_s14 = scalar_lea.hbm %s1255_s1, %s689_s24  ;;  %s143_s16 = scalar_lea.vmem [#allocation5], %s671_s25 }
  0x31   : > { %p1013_p12 = pnand %p679_p9, %p159_p11  ;;  %s151_s17 = sshll.u32 %s143_s16, 4  ;;  %s1026_s17 = int_to_ptr.vmem [resolvable:$true] %s151_s17 }
  0x32   : > { %s140_s28 = scalar_lea.sflag [#allocation6], %s959_s23  ;;  %s777_s30 = scalar_lea.hbm %s1022_s14, 8192 }
  0x33   : > { %p778_p3 = scmp.ne.s32.totalorder %s1022_s14, %s777_s30  ;;  %s782_s24 = scalar_lea.hbm %s1255_s1, 16384 }
  0x34   : > { %p783_p0 = scmp.lt.u32.totalorder %s1022_s14, %s1255_s1  ;;  %p784_p2 = scmp.lt.u32.totalorder %s782_s24, %s777_s30 }
  0x35   : > { %p780_p8 = pnand %p778_p3, %p749_p1  ;;  %p786_p5 = scmp.lt.u32.totalorder %s777_s30, %s1022_s14 }
  0x36   : > { %p785_p4 = por %p784_p2, %p783_p0 }
  0x37   : > { %p781_p10 = pneg %p780_p8 }
  0x38   : > { %p787_p7 = por %p786_p5, %p785_p4 }
  0x3a   : > { %p788_p9 = pnand %p787_p7, %p781_p10 }
  0x3c   : > { %791 = shalt.err (!%p788_p9)
}
  0x3d   : > { %s792_s25 = scalar_lea.vmem %s1026_s17, 8192  ;;  %s882_s7 = smov [#allocation5]  }
  0x3e   : > { %p793_p11 = scmp.ne.s32.totalorder %s1026_s17, %s792_s25  ;;  %s797_s8 = sshll.u32 %s882_s7, 4  ;;  %s798_s8 = int_to_ptr.vmem [resolvable:$false] %s797_s8 }
  0x3f   : > { %s799_s16 = scalar_lea.vmem %s798_s8, 16384  ;;  %p800_p6 = scmp.lt.s32.totalorder %s1026_s17, %s798_s8 }
  0x40   : > { %p795_p3 = pnand %p793_p11, %p749_p1  ;;  %p801_p0 = scmp.lt.s32.totalorder %s799_s16, %s792_s25 }
  0x42   : > { %p796_p8 = pneg %p795_p3  ;;  %p802_p2 = por %p801_p0, %p800_p6 }
  0x44   : > { %p803_p4 = pnand %p802_p2, %p796_p8 }
  0x46   : > { %806 = shalt.err (!%p803_p4)
}
  0x47   : > { %705 = dma.hbm_to_vmem [thread:$0]  (!%p974_p13), %s1022_s14, 8192, %s1026_s17, %s140_s28, %s880_s29, %s880_s29, %s881_s5  }
  0x48   : > { %163 = sbr.rel (%p1013_p12) target bundleno = 313 (0x139), region = 28  ;;  %s1060_s30 = sand.u32 (!%p1013_p12), 1, %s869_s10  }
  0x49   : > { %s680_s4 = sshll.u32 (!%p1013_p12), %s1060_s30, 9  ;;  %s166_s19 = scalar_lea.sflag (!%p1013_p12), [#allocation3], %s1060_s30 }
  0x4a   : > { %s1064_s3 = scalar_lea.vmem (!%p1013_p12), [#allocation2], %s680_s4  ;;  %p1265_p6 = scmp.ne.s32.totalorder (!%p1013_p12), %s1260_s20, 0 }
  0x4f   : > { %852 = dma.done.wait (%p1265_p6), %s166_s19, 8192  }
  0x50   : > { %854 = vsyncadd (%p1265_p6), %s166_s19, 4294959104  ;;  %s175_s23 = scalar_lea.sflag [#allocation6], %s1060_s30  ;;  %s1071_s29 = scalar_lea.vmem [#allocation5], %s680_s4 }
  0x51   : > { %856 = dma.done.wait (%p1265_p6), %s175_s23, 8192  }
  0x52   : > { %858 = vsyncadd (%p1265_p6), %s175_s23, 4294959104  ;;  %v223_v0 = vld [vmem:[%s1064_s3 + $0x100] sm:$0xff]  ;;  %v319_v2 = vld [vmem:[%s1064_s3 + $0x108] sm:$0xff]  ;;  %s682_s20 = sshll.u32 %s1060_s30, 1  ;;  %s692_s5 = sshll.u32 %s921_s13, 5 }
  0x53   : > { %v255_v1 = vld [vmem:[%s1071_s29 + $0x100] sm:$0xff]  ;;  %v351_v4 = vld [vmem:[%s1071_s29 + $0x108] sm:$0xff]  ;;  %v224_v11 = vld [vmem:[%s1064_s3 + $0x110] sm:$0xff]  ;;  %s203_s6 = scalar_lea.vmem [#allocation7], %s682_s20  ;;  %s1210_s24 = scalar_lea.hbm %s1256_s2, %s692_s5 }
  0x54   : > { %v287_v3 = vmul.f32 %v255_v1, %v223_v0  ;;  %v207_v5 = vld [vmem:[%s1064_s3] sm:$0xff]  ;;  %v383_v7 = vmul.f32 %v351_v4, %v319_v2  ;;  %v303_v9 = vld [vmem:[%s1064_s3 + $0x8] sm:$0xff]  ;;  %v256_v13 = vld [vmem:[%s1071_s29 + $0x110] sm:$0xff]  ;;  %s575_s14 = sshll.u32 %s203_s6, 4  ;;  %s561_s26 = scalar_lea.sflag [#allocation4], %s1060_s30  ;;  %s1212_s14 = int_to_ptr.vmem [resolvable:$true] %s575_s14 }
  0x55   : > { %v239_v6 = vld [vmem:[%s1071_s29] sm:$0xff]  ;;  %v335_v10 = vld [vmem:[%s1071_s29 + $0x8] sm:$0xff]  ;;  %v320_v14 = vld [vmem:[%s1064_s3 + $0x118] sm:$0xff]  ;;  %v288_v17 = vmul.f32 %v256_v13, %v224_v11  ;;  %s807_s27 = scalar_lea.vmem %s1212_s14, 32  ;;  %p1266_p1 = scmp.ne.s32.totalorder %s1261_s21, 0 }
  0x56   : > { %v271_v8 = vmul.f32 %v239_v6, %v207_v5  ;;  %v367_v12 = vmul.f32 %v335_v10, %v303_v9  ;;  %v352_v15 = vld [vmem:[%s1071_s29 + $0x118] sm:$0xff]  ;;  %v415_v16 = vadd.f32 %v383_v7, %v287_v3  ;;  %v208_v19 = vld [vmem:[%s1064_s3 + $0x10] sm:$0xff]  ;;  %v225_v25 = vld [vmem:[%s1064_s3 + $0x120] sm:$0xff]  ;;  %p808_p13 = scmp.ne.s32.totalorder %s1212_s14, %s807_s27  ;;  %s884_s13 = smov [#allocation7]  }
  0x57   : > { %v384_v18 = vmul.f32 %v352_v15, %v320_v14  ;;  %v240_v20 = vld [vmem:[%s1071_s29 + $0x10] sm:$0xff]  ;;  %v304_v21 = vld [vmem:[%s1064_s3 + $0x18] sm:$0xff]  ;;  %v257_v26 = vld [vmem:[%s1071_s29 + $0x120] sm:$0xff]  ;;  %s811_s25 = sshll.u32 %s884_s13, 4  ;;  %s812_s25 = int_to_ptr.vmem [resolvable:$false] %s811_s25 }
  0x58   : > { %v399_v22 = vadd.f32 %v367_v12, %v271_v8  ;;  %v272_v23 = vmul.f32 %v240_v20, %v208_v19  ;;  %v336_v24 = vld [vmem:[%s1071_s29 + $0x18] sm:$0xff]  ;;  %463 = vxpose.xlu1.b32.start [1/16] %v415_v16, 128  ;;  %v289_v29 = vmul.f32 %v257_v26, %v225_v25  ;;  %v321_v30 = vld [vmem:[%s1064_s3 + $0x128] sm:$0xff]  ;;  %v209_v32 = vld [vmem:[%s1064_s3 + $0x20] sm:$0xff]  ;;  %p809_p12 = pnand %p808_p13, %p1266_p1  ;;  %s813_s7 = scalar_lea.vmem %s812_s25, 64 }
  0x59   : > { %v416_v27 = vadd.f32 %v384_v18, %v288_v17  ;;  %v368_v28 = vmul.f32 %v336_v24, %v304_v21  ;;  %v353_v31 = vld [vmem:[%s1071_s29 + $0x128] sm:$0xff]  ;;  %v241_v34 = vld [vmem:[%s1071_s29 + $0x20] sm:$0xff]  ;;  %v226_v40 = vld [vmem:[%s1064_s3 + $0x130] sm:$0xff]  ;;  %p814_p5 = scmp.lt.s32.totalorder %s1212_s14, %s812_s25  ;;  %p815_p7 = scmp.lt.s32.totalorder %s813_s7, %s807_s27 }
  0x5a   : > { %431 = vxpose.xlu0.b32.start [1/16] %v399_v22, 128  ;;  %v385_v33 = vmul.f32 %v353_v31, %v321_v30  ;;  %v305_v35 = vld [vmem:[%s1064_s3 + $0x28] sm:$0xff]  ;;  %v273_v38 = vmul.f32 %v241_v34, %v209_v32  ;;  %v258_v41 = vld [vmem:[%s1071_s29 + $0x130] sm:$0xff]  ;;  %v322_v42 = vld [vmem:[%s1064_s3 + $0x138] sm:$0xff]  ;;  %p810_p10 = pneg %p809_p12 }
  0x5b   : > { %v337_v36 = vld [vmem:[%s1071_s29 + $0x28] sm:$0xff]  ;;  %v400_v37 = vadd.f32 %v368_v28, %v272_v23  ;;  %v354_v43 = vld [vmem:[%s1071_s29 + $0x138] sm:$0xff]  ;;  %v210_v44 = vld [vmem:[%s1064_s3 + $0x30] sm:$0xff]  ;;  %v290_v47 = vmul.f32 %v258_v41, %v226_v40  ;;  %p816_p9 = por %p815_p7, %p814_p5 }
  0x5c   : > { %v369_v39 = vmul.f32 %v337_v36, %v305_v35  ;;  %v242_v45 = vld [vmem:[%s1071_s29 + $0x30] sm:$0xff]  ;;  %464 = vxpose.xlu1.b32.cont [2/16] %v416_v27, 128  ;;  %v417_v46 = vadd.f32 %v385_v33, %v289_v29  ;;  %v386_v48 = vmul.f32 %v354_v43, %v322_v42  ;;  %v306_v49 = vld [vmem:[%s1064_s3 + $0x38] sm:$0xff]  ;;  %v227_v51 = vld [vmem:[%s1064_s3 + $0x140] sm:$0xff] }
  0x5d   : > { %v338_v50 = vld [vmem:[%s1071_s29 + $0x38] sm:$0xff]  ;;  %v274_v53 = vmul.f32 %v242_v45, %v210_v44  ;;  %v259_v55 = vld [vmem:[%s1071_s29 + $0x140] sm:$0xff]  ;;  %v323_v56 = vld [vmem:[%s1064_s3 + $0x148] sm:$0xff]  ;;  %p817_p11 = pnand %p816_p9, %p810_p10 }
  0x5e   : > { %432 = vxpose.xlu0.b32.cont [2/16] %v400_v37, 128  ;;  %v401_v52 = vadd.f32 %v369_v39, %v273_v38  ;;  %v370_v54 = vmul.f32 %v338_v50, %v306_v49  ;;  %v355_v57 = vld [vmem:[%s1071_s29 + $0x148] sm:$0xff]  ;;  %v211_v58 = vld [vmem:[%s1064_s3 + $0x40] sm:$0xff]  ;;  %v418_v62 = vadd.f32 %v386_v48, %v290_v47  ;;  %v291_v63 = vmul.f32 %v259_v55, %v227_v51  ;;  %v228_v1 = vld [vmem:[%s1064_s3 + $0x150] sm:$0xff] }
  0x5f   : > { %v243_v59 = vld [vmem:[%s1071_s29 + $0x40] sm:$0xff]  ;;  %v307_v60 = vld [vmem:[%s1064_s3 + $0x48] sm:$0xff]  ;;  %v387_v0 = vmul.f32 %v355_v57, %v323_v56  ;;  %v260_v2 = vld [vmem:[%s1071_s29 + $0x150] sm:$0xff] }
  0x60   : > { %v339_v61 = vld [vmem:[%s1071_s29 + $0x48] sm:$0xff]  ;;  %465 = vxpose.xlu1.b32.cont [3/16] %v417_v46, 128  ;;  %v402_v3 = vadd.f32 %v370_v54, %v274_v53  ;;  %v275_v4 = vmul.f32 %v243_v59, %v211_v58  ;;  %v324_v6 = vld [vmem:[%s1064_s3 + $0x158] sm:$0xff]  ;;  %v212_v8 = vld [vmem:[%s1064_s3 + $0x50] sm:$0xff]  ;;  %v292_v13 = vmul.f32 %v260_v2, %v228_v1 }
  0x61   : > { %v371_v5 = vmul.f32 %v339_v61, %v307_v60  ;;  %v356_v7 = vld [vmem:[%s1071_s29 + $0x158] sm:$0xff]  ;;  %v244_v9 = vld [vmem:[%s1071_s29 + $0x50] sm:$0xff]  ;;  %v419_v12 = vadd.f32 %v387_v0, %v291_v63  ;;  %v229_v15 = vld [vmem:[%s1064_s3 + $0x160] sm:$0xff] }
  0x62   : > { %433 = vxpose.xlu0.b32.cont [3/16] %v401_v52, 128  ;;  %v308_v10 = vld [vmem:[%s1064_s3 + $0x58] sm:$0xff]  ;;  %v388_v14 = vmul.f32 %v356_v7, %v324_v6  ;;  %v261_v16 = vld [vmem:[%s1071_s29 + $0x160] sm:$0xff]  ;;  %v276_v18 = vmul.f32 %v244_v9, %v212_v8  ;;  %v325_v20 = vld [vmem:[%s1064_s3 + $0x168] sm:$0xff] }
  0x63   : > { %v340_v11 = vld [vmem:[%s1071_s29 + $0x58] sm:$0xff]  ;;  %v403_v17 = vadd.f32 %v371_v5, %v275_v4  ;;  %v357_v21 = vld [vmem:[%s1071_s29 + $0x168] sm:$0xff]  ;;  %v213_v22 = vld [vmem:[%s1064_s3 + $0x60] sm:$0xff]  ;;  %v293_v27 = vmul.f32 %v261_v16, %v229_v15 }
  0x64   : > { %466 = vxpose.xlu1.b32.cont [4/16] %v418_v62, 128  ;;  %v372_v19 = vmul.f32 %v340_v11, %v308_v10  ;;  %v245_v23 = vld [vmem:[%s1071_s29 + $0x60] sm:$0xff]  ;;  %v309_v24 = vld [vmem:[%s1064_s3 + $0x68] sm:$0xff]  ;;  %v420_v26 = vadd.f32 %v388_v14, %v292_v13  ;;  %v389_v28 = vmul.f32 %v357_v21, %v325_v20  ;;  %v230_v29 = vld [vmem:[%s1064_s3 + $0x170] sm:$0xff] }
  0x65   : > { %v341_v25 = vld [vmem:[%s1071_s29 + $0x68] sm:$0xff]  ;;  %v262_v30 = vld [vmem:[%s1071_s29 + $0x170] sm:$0xff]  ;;  %v277_v32 = vmul.f32 %v245_v23, %v213_v22  ;;  %v326_v34 = vld [vmem:[%s1064_s3 + $0x178] sm:$0xff] }
  0x66   : > { %434 = vxpose.xlu0.b32.cont [4/16] %v402_v3, 128  ;;  %v404_v31 = vadd.f32 %v372_v19, %v276_v18  ;;  %v373_v33 = vmul.f32 %v341_v25, %v309_v24  ;;  %v358_v35 = vld [vmem:[%s1071_s29 + $0x178] sm:$0xff]  ;;  %v214_v36 = vld [vmem:[%s1064_s3 + $0x70] sm:$0xff]  ;;  %v421_v40 = vadd.f32 %v389_v28, %v293_v27  ;;  %v294_v41 = vmul.f32 %v262_v30, %v230_v29  ;;  %v231_v43 = vld [vmem:[%s1064_s3 + $0x180] sm:$0xff] }
  0x67   : > { %v246_v37 = vld [vmem:[%s1071_s29 + $0x70] sm:$0xff]  ;;  %v310_v38 = vld [vmem:[%s1064_s3 + $0x78] sm:$0xff]  ;;  %v390_v42 = vmul.f32 %v358_v35, %v326_v34  ;;  %v263_v44 = vld [vmem:[%s1071_s29 + $0x180] sm:$0xff] }
  0x68   : > { %467 = vxpose.xlu1.b32.cont [5/16] %v419_v12, 128  ;;  %v342_v39 = vld [vmem:[%s1071_s29 + $0x78] sm:$0xff]  ;;  %v405_v45 = vadd.f32 %v373_v33, %v277_v32  ;;  %v278_v46 = vmul.f32 %v246_v37, %v214_v36  ;;  %v327_v48 = vld [vmem:[%s1064_s3 + $0x188] sm:$0xff]  ;;  %v215_v50 = vld [vmem:[%s1064_s3 + $0x80] sm:$0xff]  ;;  %v295_v55 = vmul.f32 %v263_v44, %v231_v43 }
  0x69   : > { %v374_v47 = vmul.f32 %v342_v39, %v310_v38  ;;  %v359_v49 = vld [vmem:[%s1071_s29 + $0x188] sm:$0xff]  ;;  %v247_v51 = vld [vmem:[%s1071_s29 + $0x80] sm:$0xff]  ;;  %v422_v54 = vadd.f32 %v390_v42, %v294_v41  ;;  %v232_v57 = vld [vmem:[%s1064_s3 + $0x190] sm:$0xff] }
  0x6a   : > { %435 = vxpose.xlu0.b32.cont [5/16] %v403_v17, 128  ;;  %v311_v52 = vld [vmem:[%s1064_s3 + $0x88] sm:$0xff]  ;;  %v391_v56 = vmul.f32 %v359_v49, %v327_v48  ;;  %v264_v58 = vld [vmem:[%s1071_s29 + $0x190] sm:$0xff]  ;;  %v279_v60 = vmul.f32 %v247_v51, %v215_v50  ;;  %v328_v62 = vld [vmem:[%s1064_s3 + $0x198] sm:$0xff] }
  0x6b   : > { %v343_v53 = vld [vmem:[%s1071_s29 + $0x88] sm:$0xff]  ;;  %v406_v59 = vadd.f32 %v374_v47, %v278_v46  ;;  %v360_v63 = vld [vmem:[%s1071_s29 + $0x198] sm:$0xff]  ;;  %v216_v0 = vld [vmem:[%s1064_s3 + $0x90] sm:$0xff]  ;;  %v296_v5 = vmul.f32 %v264_v58, %v232_v57 }
  0x6c   : > { %468 = vxpose.xlu1.b32.cont [6/16] %v420_v26, 128  ;;  %v375_v61 = vmul.f32 %v343_v53, %v311_v52  ;;  %v248_v1 = vld [vmem:[%s1071_s29 + $0x90] sm:$0xff]  ;;  %v312_v2 = vld [vmem:[%s1064_s3 + $0x98] sm:$0xff]  ;;  %v423_v4 = vadd.f32 %v391_v56, %v295_v55  ;;  %v392_v6 = vmul.f32 %v360_v63, %v328_v62  ;;  %v233_v7 = vld [vmem:[%s1064_s3 + $0x1a0] sm:$0xff] }
  0x6d   : > { %v344_v3 = vld [vmem:[%s1071_s29 + $0x98] sm:$0xff]  ;;  %v265_v8 = vld [vmem:[%s1071_s29 + $0x1a0] sm:$0xff]  ;;  %v280_v10 = vmul.f32 %v248_v1, %v216_v0  ;;  %v329_v12 = vld [vmem:[%s1064_s3 + $0x1a8] sm:$0xff] }
  0x6e   : > { %436 = vxpose.xlu0.b32.cont [6/16] %v404_v31, 128  ;;  %v407_v9 = vadd.f32 %v375_v61, %v279_v60  ;;  %v376_v11 = vmul.f32 %v344_v3, %v312_v2  ;;  %v361_v13 = vld [vmem:[%s1071_s29 + $0x1a8] sm:$0xff]  ;;  %v217_v14 = vld [vmem:[%s1064_s3 + $0xa0] sm:$0xff]  ;;  %v424_v18 = vadd.f32 %v392_v6, %v296_v5  ;;  %v297_v19 = vmul.f32 %v265_v8, %v233_v7  ;;  %v234_v21 = vld [vmem:[%s1064_s3 + $0x1b0] sm:$0xff] }
  0x6f   : > { %v249_v15 = vld [vmem:[%s1071_s29 + $0xa0] sm:$0xff]  ;;  %v313_v16 = vld [vmem:[%s1064_s3 + $0xa8] sm:$0xff]  ;;  %v393_v20 = vmul.f32 %v361_v13, %v329_v12  ;;  %v266_v22 = vld [vmem:[%s1071_s29 + $0x1b0] sm:$0xff] }
  0x70   : > { %469 = vxpose.xlu1.b32.cont [7/16] %v421_v40, 128  ;;  %v345_v17 = vld [vmem:[%s1071_s29 + $0xa8] sm:$0xff]  ;;  %v408_v23 = vadd.f32 %v376_v11, %v280_v10  ;;  %v281_v24 = vmul.f32 %v249_v15, %v217_v14  ;;  %v330_v26 = vld [vmem:[%s1064_s3 + $0x1b8] sm:$0xff]  ;;  %v218_v28 = vld [vmem:[%s1064_s3 + $0xb0] sm:$0xff]  ;;  %v298_v33 = vmul.f32 %v266_v22, %v234_v21 }
  0x71   : > { %v377_v25 = vmul.f32 %v345_v17, %v313_v16  ;;  %v362_v27 = vld [vmem:[%s1071_s29 + $0x1b8] sm:$0xff]  ;;  %v250_v29 = vld [vmem:[%s1071_s29 + $0xb0] sm:$0xff]  ;;  %v425_v32 = vadd.f32 %v393_v20, %v297_v19  ;;  %v235_v35 = vld [vmem:[%s1064_s3 + $0x1c0] sm:$0xff] }
  0x72   : > { %437 = vxpose.xlu0.b32.cont [7/16] %v405_v45, 128  ;;  %v314_v30 = vld [vmem:[%s1064_s3 + $0xb8] sm:$0xff]  ;;  %v394_v34 = vmul.f32 %v362_v27, %v330_v26  ;;  %v267_v36 = vld [vmem:[%s1071_s29 + $0x1c0] sm:$0xff]  ;;  %v282_v38 = vmul.f32 %v250_v29, %v218_v28  ;;  %v331_v40 = vld [vmem:[%s1064_s3 + $0x1c8] sm:$0xff] }
  0x73   : > { %v346_v31 = vld [vmem:[%s1071_s29 + $0xb8] sm:$0xff]  ;;  %v409_v37 = vadd.f32 %v377_v25, %v281_v24  ;;  %v363_v41 = vld [vmem:[%s1071_s29 + $0x1c8] sm:$0xff]  ;;  %v219_v42 = vld [vmem:[%s1064_s3 + $0xc0] sm:$0xff]  ;;  %v299_v47 = vmul.f32 %v267_v36, %v235_v35 }
  0x74   : > { %470 = vxpose.xlu1.b32.cont [8/16] %v422_v54, 128  ;;  %v378_v39 = vmul.f32 %v346_v31, %v314_v30  ;;  %v251_v43 = vld [vmem:[%s1071_s29 + $0xc0] sm:$0xff]  ;;  %v315_v44 = vld [vmem:[%s1064_s3 + $0xc8] sm:$0xff]  ;;  %v426_v46 = vadd.f32 %v394_v34, %v298_v33  ;;  %v395_v48 = vmul.f32 %v363_v41, %v331_v40  ;;  %v236_v49 = vld [vmem:[%s1064_s3 + $0x1d0] sm:$0xff] }
  0x75   : > { %v347_v45 = vld [vmem:[%s1071_s29 + $0xc8] sm:$0xff]  ;;  %v268_v50 = vld [vmem:[%s1071_s29 + $0x1d0] sm:$0xff]  ;;  %v283_v52 = vmul.f32 %v251_v43, %v219_v42  ;;  %v332_v54 = vld [vmem:[%s1064_s3 + $0x1d8] sm:$0xff] }
  0x76   : > { %438 = vxpose.xlu0.b32.cont [8/16] %v406_v59, 128  ;;  %v410_v51 = vadd.f32 %v378_v39, %v282_v38  ;;  %v379_v53 = vmul.f32 %v347_v45, %v315_v44  ;;  %v364_v55 = vld [vmem:[%s1071_s29 + $0x1d8] sm:$0xff]  ;;  %v220_v56 = vld [vmem:[%s1064_s3 + $0xd0] sm:$0xff]  ;;  %v427_v60 = vadd.f32 %v395_v48, %v299_v47  ;;  %v300_v61 = vmul.f32 %v268_v50, %v236_v49  ;;  %v237_v63 = vld [vmem:[%s1064_s3 + $0x1e0] sm:$0xff] }
  0x77   : > { %v252_v57 = vld [vmem:[%s1071_s29 + $0xd0] sm:$0xff]  ;;  %v316_v58 = vld [vmem:[%s1064_s3 + $0xd8] sm:$0xff]  ;;  %v396_v62 = vmul.f32 %v364_v55, %v332_v54  ;;  %v269_v0 = vld [vmem:[%s1071_s29 + $0x1e0] sm:$0xff] }
  0x78   : > { %471 = vxpose.xlu1.b32.cont [9/16] %v423_v4, 128  ;;  %v348_v59 = vld [vmem:[%s1071_s29 + $0xd8] sm:$0xff]  ;;  %v411_v1 = vadd.f32 %v379_v53, %v283_v52  ;;  %v284_v2 = vmul.f32 %v252_v57, %v220_v56  ;;  %v333_v4 = vld [vmem:[%s1064_s3 + $0x1e8] sm:$0xff]  ;;  %v221_v6 = vld [vmem:[%s1064_s3 + $0xe0] sm:$0xff]  ;;  %v301_v11 = vmul.f32 %v269_v0, %v237_v63 }
  0x79   : > { %v380_v3 = vmul.f32 %v348_v59, %v316_v58  ;;  %v365_v5 = vld [vmem:[%s1071_s29 + $0x1e8] sm:$0xff]  ;;  %v253_v7 = vld [vmem:[%s1071_s29 + $0xe0] sm:$0xff]  ;;  %v428_v10 = vadd.f32 %v396_v62, %v300_v61  ;;  %v238_v13 = vld [vmem:[%s1064_s3 + $0x1f0] sm:$0xff] }
  0x7a   : > { %439 = vxpose.xlu0.b32.cont [9/16] %v407_v9, 128  ;;  %v317_v8 = vld [vmem:[%s1064_s3 + $0xe8] sm:$0xff]  ;;  %v397_v12 = vmul.f32 %v365_v5, %v333_v4  ;;  %v270_v14 = vld [vmem:[%s1071_s29 + $0x1f0] sm:$0xff]  ;;  %v285_v16 = vmul.f32 %v253_v7, %v221_v6  ;;  %v366_v19 = vld [vmem:[%s1071_s29 + $0x1f8] sm:$0xff] }
  0x7b   : > { %v349_v9 = vld [vmem:[%s1071_s29 + $0xe8] sm:$0xff]  ;;  %v412_v15 = vadd.f32 %v380_v3, %v284_v2  ;;  %v222_v20 = vld [vmem:[%s1064_s3 + $0xf0] sm:$0xff]  ;;  %v318_v22 = vld [vmem:[%s1064_s3 + $0xf8] sm:$0xff]  ;;  %v302_v25 = vmul.f32 %v270_v14, %v238_v13 }
  0x7c   : > { %472 = vxpose.xlu1.b32.cont [10/16] %v424_v18, 128  ;;  %v381_v17 = vmul.f32 %v349_v9, %v317_v8  ;;  %v334_v18 = vld [vmem:[%s1064_s3 + $0x1f8] sm:$0xff]  ;;  %v254_v21 = vld [vmem:[%s1071_s29 + $0xf0] sm:$0xff]  ;;  %v429_v24 = vadd.f32 %v397_v12, %v301_v11 }
  0x7d   : > { %v398_v26 = vmul.f32 %v366_v19, %v334_v18  ;;  %v286_v28 = vmul.f32 %v254_v21, %v222_v20 }
  0x7e   : > { %440 = vxpose.xlu0.b32.cont [10/16] %v408_v23, 128  ;;  %v350_v23 = vld [vmem:[%s1071_s29 + $0xf8] sm:$0xff]  ;;  %v413_v27 = vadd.f32 %v381_v17, %v285_v16 }
  0x7f   : > { %v382_v29 = vmul.f32 %v350_v23, %v318_v22  ;;  %v430_v30 = vadd.f32 %v398_v26, %v302_v25 }
  0x80   : > { %473 = vxpose.xlu1.b32.cont [11/16] %v425_v32, 128 }
  0x81   : > { %v414_v31 = vadd.f32 %v382_v29, %v286_v28 }
  0x82   : > { %441 = vxpose.xlu0.b32.cont [11/16] %v409_v37, 128 }
  0x84   : > { %474 = vxpose.xlu1.b32.cont [12/16] %v426_v46, 128 }
  0x86   : > { %442 = vxpose.xlu0.b32.cont [12/16] %v410_v51, 128 }
  0x88   : > { %475 = vxpose.xlu1.b32.cont [13/16] %v427_v60, 128 }
  0x8a   : > { %443 = vxpose.xlu0.b32.cont [13/16] %v411_v1, 128 }
  0x8c   : > { %476 = vxpose.xlu1.b32.cont [14/16] %v428_v10, 128 }
  0x8e   : > { %444 = vxpose.xlu0.b32.cont [14/16] %v412_v15, 128 }
  0x90   : > { %477 = vxpose.xlu1.b32.cont [15/16] %v429_v24, 128 }
  0x92   : > { %445 = vxpose.xlu0.b32.cont [15/16] %v413_v27, 128 }
  0x94   : > { %478 = vxpose.xlu1.b32.end [16/16] %v430_v30, 128 }
  0x96   : > { %446 = vxpose.xlu0.b32.end [16/16] %v414_v31, 128 }
  0xd8   : > { %v479_v32 = vpop.trf.xlu1 }
  0xda   : > { %v447_v33 = vpop.trf.xlu0 }
  0xdc   : > { %v480_v34 = vpop.trf.xlu1 }
  0xdd   : > { %v516_v49 = vadd.f32 %v480_v34, %v479_v32 }
  0xde   : > { %v448_v35 = vpop.trf.xlu0 }
  0xdf   : > { %v495_v51 = vadd.f32 %v448_v35, %v447_v33  ;;  %v883_v33 = vmov 1966171168   ;;  %v543_v35 = vlaneseq }
  0xe0   : > { %v481_v36 = vpop.trf.xlu1  ;;  %v541_v34 = vunpack.c.l.s4 %v883_v33 }
  0xe1   : > { %v517_v52 = vadd.f32 %v516_v49, %v481_v36  ;;  %vm557_vm0 = vcmp.lt.s32.totalorder %v543_v35, 256 }
  0xe2   : > { %v449_v37 = vpop.trf.xlu0 }
  0xe3   : > { %v496_v53 = vadd.f32 %v495_v51, %v449_v37 }
  0xe4   : > { %v482_v38 = vpop.trf.xlu1 }
  0xe5   : > { %v518_v55 = vadd.f32 %v517_v52, %v482_v38 }
  0xe6   : > { %v450_v39 = vpop.trf.xlu0 }
  0xe7   : > { %v497_v57 = vadd.f32 %v496_v53, %v450_v39 }
  0xe8   : > { %v483_v40 = vpop.trf.xlu1 }
  0xe9   : > { %v519_v58 = vadd.f32 %v518_v55, %v483_v40  ;;  %v542_v40 = vunpack.c.0.s8 %v541_v34 }
  0xea   : > { %v451_v41 = vpop.trf.xlu0 }
  0xeb   : > { %v498_v59 = vadd.f32 %v497_v57, %v451_v41  ;;  %v544_v41 = vshrl.u32 %v543_v35, 7 }
  0xec   : > { %v484_v42 = vpop.trf.xlu1 }
  0xed   : > { %v520_v61 = vadd.f32 %v519_v58, %v484_v42 }
  0xee   : > { %v452_v43 = vpop.trf.xlu0 }
  0xef   : > { %v499_v63 = vadd.f32 %v498_v59, %v452_v43 }
  0xf0   : > { %v485_v44 = vpop.trf.xlu1 }
  0xf1   : > { %v521_v0 = vadd.f32 %v520_v61, %v485_v44 }
  0xf2   : > { %v453_v45 = vpop.trf.xlu0 }
  0xf3   : > { %v500_v1 = vadd.f32 %v499_v63, %v453_v45 }
  0xf4   : > { %v486_v46 = vpop.trf.xlu1 }
  0xf5   : > { %v522_v3 = vadd.f32 %v521_v0, %v486_v46  ;;  %v545_v46 = vsub.s32 %v542_v40, %v544_v41 }
  0xf6   : > { %v454_v47 = vpop.trf.xlu0 }
  0xf7   : > { %v501_v5 = vadd.f32 %v500_v1, %v454_v47 }
  0xf8   : > { %v487_v48 = vpop.trf.xlu1 }
  0xf9   : > { %v523_v6 = vadd.f32 %v522_v3, %v487_v48 }
  0xfa   : > { %v455_v50 = vpop.trf.xlu0 }
  0xfb   : > { %v502_v7 = vadd.f32 %v501_v5, %v455_v50 }
  0xfc   : > { %v488_v54 = vpop.trf.xlu1 }
  0xfd   : > { %v524_v9 = vadd.f32 %v523_v6, %v488_v54 }
  0xfe   : > { %v456_v56 = vpop.trf.xlu0 }
  0xff   : > { %v503_v11 = vadd.f32 %v502_v7, %v456_v56 }
 0x100   : > { %v489_v60 = vpop.trf.xlu1 }
 0x101   : > { %v525_v12 = vadd.f32 %v524_v9, %v489_v60 }
 0x102   : > { %v457_v62 = vpop.trf.xlu0 }
 0x103   : > { %v504_v13 = vadd.f32 %v503_v11, %v457_v62 }
 0x104   : > { %v490_v2 = vpop.trf.xlu1 }
 0x105   : > { %v526_v15 = vadd.f32 %v525_v12, %v490_v2 }
 0x106   : > { %v458_v4 = vpop.trf.xlu0 }
 0x107   : > { %v505_v17 = vadd.f32 %v504_v13, %v458_v4 }
 0x108   : > { %v491_v8 = vpop.trf.xlu1 }
 0x109   : > { %v527_v18 = vadd.f32 %v526_v15, %v491_v8 }
 0x10a   : > { %v459_v10 = vpop.trf.xlu0 }
 0x10b   : > { %v506_v19 = vadd.f32 %v505_v17, %v459_v10 }
 0x10c   : > { %v492_v14 = vpop.trf.xlu1 }
 0x10d   : > { %v528_v21 = vadd.f32 %v527_v18, %v492_v14 }
 0x10e   : > { %v460_v16 = vpop.trf.xlu0 }
 0x10f   : > { %v507_v23 = vadd.f32 %v506_v19, %v460_v16 }
 0x110   : > { %v493_v20 = vpop.trf.xlu1 }
 0x111   : > { %v529_v24 = vadd.f32 %v528_v21, %v493_v20 }
 0x112   : > { %v461_v22 = vpop.trf.xlu0 }
 0x113   : > { %v508_v25 = vadd.f32 %v507_v23, %v461_v22 }
 0x114   : > { %v494_v26 = vpop.trf.xlu1 }
 0x115   : > { %v530_v27 = vadd.f32 %v529_v24, %v494_v26 }
 0x116   : > { %v462_v28 = vpop.trf.xlu0 }
 0x117   : > { %v509_v29 = vadd.f32 %v508_v25, %v462_v28  ;;  %v531_v30 = vrot.slane %v530_v27, 4 }
 0x119   : > { %v510_v31 = vrot.slane %v509_v29, 4  ;;  %v532_v32 = vadd.f32 %v531_v30, %v530_v27 }
 0x11b   : > { %v511_v36 = vadd.f32 %v510_v31, %v509_v29  ;;  %v533_v37 = vrot.slane %v532_v32, 2 }
 0x11d   : > { %v512_v38 = vrot.slane %v511_v36, 2  ;;  %v534_v39 = vadd.f32 %v533_v37, %v532_v32 }
 0x11f   : > { %v513_v42 = vadd.f32 %v512_v38, %v511_v36  ;;  %v535_v43 = vrot.slane %v534_v39, 1 }
 0x121   : > { %v514_v44 = vrot.slane %v513_v42, 1  ;;  %v536_v45 = vadd.f32 %v535_v43, %v534_v39 }
 0x123   : > { %v515_v47 = vadd.f32 %v514_v44, %v513_v42 }
 0x125   : > { %v539_v48 = vcombine.low %v515_v47, %v536_v45 }
 0x127   : > { %v546_v49 = vrot.slane %v539_v48, %v545_v46 }
 0x129   : > { %v553_v50 = vrot.slane %v546_v49, %v545_v46 }
 0x12b   : > { %559 = vst.msk [vmem:[%s203_s6] sm:$0x3] %vm557_vm0, %v553_v50 }
 0x12c   : > { %820 = shalt.err (!%p817_p11)
}
 0x12d   : > { %s821_s8 = scalar_lea.hbm %s1210_s24, 32  ;;  %s825_s4 = scalar_lea.hbm %s1256_s2, 64 }
 0x12e   : > { %p822_p3 = scmp.ne.s32.totalorder %s1210_s24, %s821_s8  ;;  %p826_p2 = scmp.lt.u32.totalorder %s1210_s24, %s1256_s2 }
 0x12f   : > { %p827_p4 = scmp.lt.u32.totalorder %s825_s4, %s821_s8  ;;  %p829_p13 = scmp.lt.u32.totalorder %s821_s8, %s1210_s24 }
 0x130   : > { %p823_p8 = pnand %p822_p3, %p1266_p1 }
 0x131   : > { %p828_p6 = por %p827_p4, %p826_p2 }
 0x132   : > { %p824_p0 = pneg %p823_p8 }
 0x133   : > { %p830_p12 = por %p829_p13, %p828_p6 }
 0x135   : > { %p831_p10 = pnand %p830_p12, %p824_p0 }
 0x137   : > { %834 = shalt.err (!%p831_p10)
}
 0x138   : > { %697 = dma.vmem_to_hbm [thread:$0]  (%p1266_p1), %s1212_s14, 32, %s1210_s24, %s561_s26  }
 0x139 PF: > { %s587_s23 = sand.u32 1, %s865_s9   ;;  %p1267_p5 = scmp.ne.s32.totalorder %s1262_s22, 0 }
 0x13a   : > { %p1268_p7 = scmp.ge.s32.totalorder %s877_s12, 2  ;;  %s588_s29 = scalar_lea.sflag [#allocation4], %s587_s23 }
 0x13c   : > { %p707_p9 = pnand %p1268_p7, %p1267_p5 }
 0x13e   : > { %860 = dma.done.wait (!%p707_p9), %s588_s29, 32  }
 0x13f   : > { %862 = vsyncadd (!%p707_p9), %s588_s29, 4294967264  ;;  %p18_p11 = scmp.ge.s32.totalorder %s925_s15, 4   ;;  %s1269_s9 = smov %s869_s10 }
 0x140   : > { %s1270_s10 = smov %s873_s11  ;;  %s1271_s11 = smov %s937_s18 }
 0x141   : > { %s1272_s12 = smov %s925_s15  ;;  %20 = sbr.rel (!%p18_p11) target bundleno = 7 (0x7), region = 86 }
 0x148   :  { %593 = vsyncpa [#allocation3], 1 }
 0x149   :  { %595 = vsyncpa [#allocation3 + $0x1], 1 }
 0x14a   :  { %596 = vsyncpa [#allocation6], 1 }
 0x14b   :  { %598 = vsyncpa [#allocation6 + $0x1], 1 }
 0x14c   :  { %599 = vsyncpa [#allocation4], 1 }
 0x14d   :  { %601 = vsyncpa [#allocation4 + $0x1], 1 }

</bundles_post_ra>
